<compile_context>
chip_gen: v6e
topology: v6e:2x2x1
jax: 0.10.0
libtpu: 0.0.40
codegen_flags: <defaults>
</compile_context>

<pallas_src>
import functools

import jax
import jax.numpy as jnp
from jax.experimental import pallas as pl
from jax.experimental.pallas import tpu as pltpu


def _round_up(x, m):
    return ((x + m - 1) // m) * m


def _dense_net_kernel(x_ref, w1_ref, b1_ref, w2_ref, b2_ref, w3_ref, b3_ref,
                      out_ref, *, final_relu):
    """Fused forward: 3 x (matmul + bias [+ ReLU]) on one (TB, features) batch tile.

    x arrives in f32 and is cast to the weight (MXU) dtype on the VPU; all matmuls
    accumulate in f32 and bias-add / ReLU stay in f32.
    """
    cdt = w1_ref.dtype                       # MXU compute dtype (bf16 or f32)
    x = x_ref[...].astype(cdt)               # in-kernel cast (no wrapper XLA pass)

    # dense1: in_dim -> num_units
    h = jnp.dot(x, w1_ref[...], preferred_element_type=jnp.float32)
    h = jnp.maximum(h + b1_ref[...], 0.0)

    # dense2: num_units -> 2 * num_units
    h = jnp.dot(h.astype(cdt), w2_ref[...], preferred_element_type=jnp.float32)
    h = jnp.maximum(h + b2_ref[...], 0.0)

    # dense3: 2 * num_units -> out_dim
    h = jnp.dot(h.astype(cdt), w3_ref[...], preferred_element_type=jnp.float32)
    h = h + b3_ref[...]
    if final_relu:
        h = jnp.maximum(h, 0.0)

    out_ref[...] = h.astype(out_ref.dtype)


def _resident_spec(shape, single_buffer):
    """Grid-invariant whole-array block: one DMA, stays resident in VMEM."""
    ndim = len(shape)
    index_map = lambda i, _n=ndim: (0,) * _n
    if single_buffer:
        # Single-buffer large resident weights (second buffer is pure VMEM waste).
        try:
            return pl.BlockSpec(shape, index_map, pipeline_mode=pl.Buffered(1))
        except (TypeError, AttributeError):
            pass  # older JAX without pipeline_mode: fall back to default buffering
    return pl.BlockSpec(shape, index_map)


@functools.partial(jax.jit, static_argnames=("final_relu", "tb"))
def dense_net_forward(x, params, *, final_relu=True, tb=None):
    """x: (B, in_dim) f32. params: dict (weights may be pre-cast to bf16).

    Returns (B, out_dim) f32.
    """
    w1, b1 = params["w1"], params["b1"]
    w2, b2 = params["w2"], params["b2"]
    w3, b3 = params["w3"], params["b3"]
    B, in_dim = x.shape
    n1 = w1.shape[1]
    n2 = w2.shape[1]
    out_dim = w3.shape[1]

    # --- Batch tile selection -------------------------------------------------
    # B <= cap: tb == B (full-dim block is legal for any B; no padding, no slice).
    # B  > cap: tile at cap (multiple of 8) and pad the batch.
    cap = 512
    if tb is None:
        tb = B if B <= cap else cap
    b_pad = _round_up(B, tb)
    # v7x has 2 TensorCores: ensure >= 2 grid steps once there is enough batch.
    if b_pad // tb < 2 and b_pad >= 256:
        tb = _round_up(b_pad // 2, 8)
        b_pad = _round_up(B, tb)
    grid = (b_pad // tb,)

    xk = x if b_pad == B else jnp.pad(x, ((0, b_pad - B), (0, 0)))

    # --- VMEM budget / buffering ----------------------------------------------
    w_itemsize = w1.dtype.itemsize
    resident_bytes = ((in_dim * n1 + n1 * n2 + n2 * out_dim) * w_itemsize
                      + (n1 + n2 + out_dim) * 4)
    single_buffer = resident_bytes >= (4 << 20)   # only bother when weights are big

    vmem_est = ((1 if single_buffer else 2) * resident_bytes
                + 2 * tb * in_dim * x.dtype.itemsize     # x tile (double buffered)
                + 2 * tb * out_dim * 4                    # out tile
                + 2 * tb * (n1 + n2) * 4)                 # f32 intermediates headroom
    vmem_limit = int(min(max(2 * vmem_est, 32 << 20), 100 << 20))

    # --- Cost hint for XLA scheduling around the custom call --------------------
    flops = 2 * b_pad * (in_dim * n1 + n1 * n2 + n2 * out_dim)
    bytes_accessed = (b_pad * in_dim * x.dtype.itemsize
                      + resident_bytes
                      + b_pad * out_dim * 4)
    cost = pl.CostEstimate(flops=int(flops), transcendentals=0,
                           bytes_accessed=int(bytes_accessed))

    kernel = functools.partial(_dense_net_kernel, final_relu=final_relu)

    out = pl.pallas_call(
        kernel,
        out_shape=jax.ShapeDtypeStruct((b_pad, out_dim), jnp.float32),
        grid=grid,
        in_specs=[
            pl.BlockSpec((tb, in_dim), lambda i: (i, 0)),   # x: blocked over batch
            _resident_spec(w1.shape, single_buffer),
            _resident_spec(b1.shape, single_buffer),
            _resident_spec(w2.shape, single_buffer),
            _resident_spec(b2.shape, single_buffer),
            _resident_spec(w3.shape, single_buffer),
            _resident_spec(b3.shape, single_buffer),
        ],
        out_specs=pl.BlockSpec((tb, out_dim), lambda i: (i, 0)),
        compiler_params=pltpu.CompilerParams(
            dimension_semantics=("parallel",),
            vmem_limit_bytes=vmem_limit),
        cost_estimate=cost,
    )(xk, w1, b1, w2, b2, w3, b3)

    if b_pad != B:
        out = out[:B]
    return out


def prepare_dense_net_params(params, use_bf16=True):
    """Cast weight matrices to the MXU dtype ONCE, outside the jitted hot path.

    Biases stay f32 (bias-add / ReLU are done in f32 inside the kernel).
    """
    out = dict(params)
    if use_bf16:
        for k in ("w1", "w2", "w3"):
            out[k] = params[k].astype(jnp.bfloat16)
    return out


def init_dense_net_params(key, in_dim, out_dim, num_units):
    """Deterministic init mimicking nn.Linear (uniform +/- 1/sqrt(fan_in))."""
    def linear_init(k, fan_in, fan_out):
        kw, kb = jax.random.split(k)
        bound = 1.0 / jnp.sqrt(jnp.float32(fan_in))
        w = jax.random.uniform(kw, (fan_in, fan_out), jnp.float32,
                               minval=-bound, maxval=bound)
        b = jax.random.uniform(kb, (1, fan_out), jnp.float32,
                               minval=-bound, maxval=bound)
        return w, b

    k1, k2, k3 = jax.random.split(key, 3)
    w1, b1 = linear_init(k1, in_dim, num_units * 1)
    w2, b2 = linear_init(k2, num_units * 1, num_units * 2)
    w3, b3 = linear_init(k3, num_units * 2, out_dim)
    return {"w1": w1, "b1": b1, "w2": w2, "b2": b2, "w3": w3, "b3": b3}


def _reference_forward(x, p, use_bf16=True, final_relu=True):
    """Pure-JAX reference with the same MXU-dtype casts as the kernel."""
    dt = jnp.bfloat16 if use_bf16 else jnp.float32
    h = jnp.dot(x.astype(dt), p["w1"].astype(dt), preferred_element_type=jnp.float32)
    h = jnp.maximum(h + p["b1"], 0.0)
    h = jnp.dot(h.astype(dt), p["w2"].astype(dt), preferred_element_type=jnp.float32)
    h = jnp.maximum(h + p["b2"], 0.0)
    h = jnp.dot(h.astype(dt), p["w3"].astype(dt), preferred_element_type=jnp.float32)
    h = h + p["b3"]
    if final_relu:
        h = jnp.maximum(h, 0.0)
    return h


if __name__ == "__main__":
    in_dim, out_dim, num_units = 16, 8, 32
    batch = 8

    key = jax.random.PRNGKey(0)
    kx, kp = jax.random.split(key)
    x = jax.random.normal(kx, (batch, in_dim), jnp.float32)
    params = init_dense_net_params(kp, in_dim, out_dim, num_units)

    # One-time bf16 cast of the weights, outside the jitted forward.
    kernel_params = prepare_dense_net_params(params, use_bf16=True)

    out = dense_net_forward(x, kernel_params)
    out = jax.block_until_ready(out)

    ref = _reference_forward(x, params, use_bf16=True)
    assert out.shape == (batch, out_dim)
    assert jnp.allclose(out, ref, atol=1e-3, rtol=1e-3), "mismatch vs reference"

    # Loose sanity check against full-f32 math (bf16 drift bound).
    ref_f32 = _reference_forward(x, params, use_bf16=False)
    assert jnp.allclose(out, ref_f32, atol=5e-2, rtol=5e-2), "bf16 drift too large"

    print("KERNEL_OK")
</pallas_src>

<mosaic_0001>
module attributes {stable_mosaic.version = 11 : i64} {
  func.func @_dense_net_kernel(%arg0: i32, %arg1: memref<8x16xf32, #tpu.memory_space<vmem>>, %arg2: memref<16x32xbf16, #tpu.memory_space<vmem>>, %arg3: memref<1x32xf32, #tpu.memory_space<vmem>>, %arg4: memref<32x64xbf16, #tpu.memory_space<vmem>>, %arg5: memref<1x64xf32, #tpu.memory_space<vmem>>, %arg6: memref<64x8xbf16, #tpu.memory_space<vmem>>, %arg7: memref<1x8xf32, #tpu.memory_space<vmem>>, %arg8: memref<8x8xf32, #tpu.memory_space<vmem>>) attributes {dimension_semantics = [#tpu.dimension_semantics<parallel>], iteration_bounds = array<i64: 1>, scalar_prefetch = 0 : i64, scratch_operands = 0 : i64, tpu.core_type = #tpu.core_type<tc>, window_params = [{transform_indices = @transform_0, window_bounds = array<i64: 8, 16>}, {pipeline_mode = #tpu.pipeline_mode<synchronous>, transform_indices = @transform_1, window_bounds = array<i64: 16, 32>}, {pipeline_mode = #tpu.pipeline_mode<synchronous>, transform_indices = @transform_2, window_bounds = array<i64: 1, 32>}, {pipeline_mode = #tpu.pipeline_mode<synchronous>, transform_indices = @transform_3, window_bounds = array<i64: 32, 64>}, {pipeline_mode = #tpu.pipeline_mode<synchronous>, transform_indices = @transform_4, window_bounds = array<i64: 1, 64>}, {pipeline_mode = #tpu.pipeline_mode<synchronous>, transform_indices = @transform_5, window_bounds = array<i64: 64, 8>}, {pipeline_mode = #tpu.pipeline_mode<synchronous>, transform_indices = @transform_6, window_bounds = array<i64: 1, 8>}, {transform_indices = @transform_7, window_bounds = array<i64: 8, 8>}]} {
    %c0 = arith.constant 0 : index
    %c0_0 = arith.constant 0 : index
    %0 = vector.load %arg1[%c0, %c0_0] : memref<8x16xf32, #tpu.memory_space<vmem>>, vector<8x16xf32>
    %1 = arith.truncf %0 : vector<8x16xf32> to vector<8x16xbf16>
    %c0_1 = arith.constant 0 : index
    %c0_2 = arith.constant 0 : index
    %2 = vector.load %arg2[%c0_1, %c0_2] : memref<16x32xbf16, #tpu.memory_space<vmem>>, vector<16x32xbf16>
    %cst = arith.constant dense<0.000000e+00> : vector<8x32xf32>
    %3 = tpu.matmul %1, %2, %cst {dimension_numbers = #tpu.dot_dimension_numbers<[1], [0], [0], [1], [0, 0, 1, 1], [], []>} : vector<8x16xbf16>, vector<16x32xbf16>, vector<8x32xf32> -> vector<8x32xf32>
    %c0_3 = arith.constant 0 : index
    %c0_4 = arith.constant 0 : index
    %4 = vector.load %arg3[%c0_3, %c0_4] : memref<1x32xf32, #tpu.memory_space<vmem>>, vector<1x32xf32>
    %5 = vector.broadcast %4 : vector<1x32xf32> to vector<8x32xf32>
    %6 = arith.addf %3, %5 : vector<8x32xf32>
    %cst_5 = arith.constant 0.000000e+00 : f32
    %7 = vector.broadcast %cst_5 : f32 to vector<8x32xf32>
    %8 = arith.maximumf %6, %7 : vector<8x32xf32>
    %9 = arith.truncf %8 : vector<8x32xf32> to vector<8x32xbf16>
    %c0_6 = arith.constant 0 : index
    %c0_7 = arith.constant 0 : index
    %10 = vector.load %arg4[%c0_6, %c0_7] : memref<32x64xbf16, #tpu.memory_space<vmem>>, vector<32x64xbf16>
    %cst_8 = arith.constant dense<0.000000e+00> : vector<8x64xf32>
    %11 = tpu.matmul %9, %10, %cst_8 {dimension_numbers = #tpu.dot_dimension_numbers<[1], [0], [0], [1], [0, 0, 1, 1], [], []>} : vector<8x32xbf16>, vector<32x64xbf16>, vector<8x64xf32> -> vector<8x64xf32>
    %c0_9 = arith.constant 0 : index
    %c0_10 = arith.constant 0 : index
    %12 = vector.load %arg5[%c0_9, %c0_10] : memref<1x64xf32, #tpu.memory_space<vmem>>, vector<1x64xf32>
    %13 = vector.broadcast %12 : vector<1x64xf32> to vector<8x64xf32>
    %14 = arith.addf %11, %13 : vector<8x64xf32>
    %cst_11 = arith.constant 0.000000e+00 : f32
    %15 = vector.broadcast %cst_11 : f32 to vector<8x64xf32>
    %16 = arith.maximumf %14, %15 : vector<8x64xf32>
    %17 = arith.truncf %16 : vector<8x64xf32> to vector<8x64xbf16>
    %c0_12 = arith.constant 0 : index
    %c0_13 = arith.constant 0 : index
    %18 = vector.load %arg6[%c0_12, %c0_13] : memref<64x8xbf16, #tpu.memory_space<vmem>>, vector<64x8xbf16>
    %cst_14 = arith.constant dense<0.000000e+00> : vector<8x8xf32>
    %19 = tpu.matmul %17, %18, %cst_14 {dimension_numbers = #tpu.dot_dimension_numbers<[1], [0], [0], [1], [0, 0, 1, 1], [], []>} : vector<8x64xbf16>, vector<64x8xbf16>, vector<8x8xf32> -> vector<8x8xf32>
    %c0_15 = arith.constant 0 : index
    %c0_16 = arith.constant 0 : index
    %20 = vector.load %arg7[%c0_15, %c0_16] : memref<1x8xf32, #tpu.memory_space<vmem>>, vector<1x8xf32>
    %21 = vector.broadcast %20 : vector<1x8xf32> to vector<8x8xf32>
    %22 = arith.addf %19, %21 : vector<8x8xf32>
    %cst_17 = arith.constant 0.000000e+00 : f32
    %23 = vector.broadcast %cst_17 : f32 to vector<8x8xf32>
    %24 = arith.maximumf %22, %23 : vector<8x8xf32>
    %c0_18 = arith.constant 0 : index
    %c0_19 = arith.constant 0 : index
    %25 = vector.load %arg8[%c0_18, %c0_19] : memref<8x8xf32, #tpu.memory_space<vmem>>, vector<8x8xf32>
    tpu.vector_store %arg8[%c0_18, %c0_19], %24 {strides = array<i32>} : memref<8x8xf32, #tpu.memory_space<vmem>>, vector<8x8xf32>,
    return
  }
  func.func @transform_0(%arg0: i32) -> (i32, i32) {
    %c0_i32 = arith.constant 0 : i32
    %c0_i32_0 = arith.constant 0 : i32
    return %arg0, %c0_i32 : i32, i32
  }
  func.func @transform_1(%arg0: i32) -> (i32, i32) {
    %c0_i32 = arith.constant 0 : i32
    %c0_i32_0 = arith.constant 0 : i32
    %c0_i32_1 = arith.constant 0 : i32
    return %c0_i32, %c0_i32_0 : i32, i32
  }
  func.func @transform_2(%arg0: i32) -> (i32, i32) {
    %c0_i32 = arith.constant 0 : i32
    %c0_i32_0 = arith.constant 0 : i32
    %c0_i32_1 = arith.constant 0 : i32
    return %c0_i32, %c0_i32_0 : i32, i32
  }
  func.func @transform_3(%arg0: i32) -> (i32, i32) {
    %c0_i32 = arith.constant 0 : i32
    %c0_i32_0 = arith.constant 0 : i32
    %c0_i32_1 = arith.constant 0 : i32
    return %c0_i32, %c0_i32_0 : i32, i32
  }
  func.func @transform_4(%arg0: i32) -> (i32, i32) {
    %c0_i32 = arith.constant 0 : i32
    %c0_i32_0 = arith.constant 0 : i32
    %c0_i32_1 = arith.constant 0 : i32
    return %c0_i32, %c0_i32_0 : i32, i32
  }
  func.func @transform_5(%arg0: i32) -> (i32, i32) {
    %c0_i32 = arith.constant 0 : i32
    %c0_i32_0 = arith.constant 0 : i32
    %c0_i32_1 = arith.constant 0 : i32
    return %c0_i32, %c0_i32_0 : i32, i32
  }
  func.func @transform_6(%arg0: i32) -> (i32, i32) {
    %c0_i32 = arith.constant 0 : i32
    %c0_i32_0 = arith.constant 0 : i32
    %c0_i32_1 = arith.constant 0 : i32
    return %c0_i32, %c0_i32_0 : i32, i32
  }
  func.func @transform_7(%arg0: i32) -> (i32, i32) {
    %c0_i32 = arith.constant 0 : i32
    %c0_i32_0 = arith.constant 0 : i32
    return %arg0, %c0_i32 : i32, i32
  }
}

</mosaic_0001>

<bundles_post_ra>
// kernel: dense_net_forward.1
= control target key start
LH: loop header
LB: loop body
LE: loop exit
PB: predicated region body
PF: predicated region fallthrough
CT: control target
= control target key end

     0   :  { %v341_v1 = vmov 0.0   ;;  %vm342_vm0 = vmmov 0   ;;  %vm45_vm1 = vcmask 130048   ;;  %s420_s0 = inlined_call_operand.vmem [shape: f32[8,16], index: 0, kind: input, shape index: {}]   ;;  %s421_s1 = inlined_call_operand.vmem [shape: bf16[16,32], index: 1, kind: input, shape index: {}]   ;;  %s422_s2 = inlined_call_operand.vmem [shape: f32[1,32], index: 2, kind: input, shape index: {}]   ;;  %s423_s3 = inlined_call_operand.vmem [shape: bf16[32,64], index: 3, kind: input, shape index: {}]   ;;  %s424_s4 = inlined_call_operand.vmem [shape: f32[1,64], index: 4, kind: input, shape index: {}]   ;;  %s425_s5 = inlined_call_operand.vmem [shape: bf16[64,8], index: 5, kind: input, shape index: {}]   ;;  %s426_s6 = inlined_call_operand.vmem [shape: f32[1,8], index: 6, kind: input, shape index: {}]   ;;  %s427_s7 = inlined_call_operand.hbm [shape: f32[8,8], index: 7, kind: output, shape index: {}]  }
   0x1   :  { %v312_v0 = vld [vmem:[%s421_s1] sm:$0xff]   ;;  %283 = vmatprep.subr.bf16.mxu1 %v341_v1  ;;  %297 = vmatprep.subr.bf16.mxu0 %v341_v1  ;;  %v313_v4 = vld [vmem:[%s423_s3 + $0x8] sm:$0xff]  }
   0x2   :  { %v28_v2 = vld [vmem:[%s420_s0] sm:$0xff]  ;;  %284 = vmatpush3.bf16.msra.mxu1 %v312_v0  ;;  %285 = vmatprep.mubr.msk.bf16.mxu1 %vm342_vm0, %v341_v1 }
   0x3   :  { %v29_v3 = vpack.c.bf16 %v28_v2, %v28_v2  ;;  %289 = vmatprep.subr.bf16.mxu1 %v341_v1  ;;  %305 = vmatprep.mubr.msk.bf16.mxu0 %vm342_vm0, %v341_v1 }
   0x5   :  { %286 = vmatmul.mubr.msk.bf16.vlgmr.msra.gmra.mxu1 %vm45_vm1, %v29_v3 }
   0x6   :  { %290 = vmatpush3.bf16.msra.mxu1 %v313_v4  ;;  %293 = vmatprep.mubr.msk.bf16.mxu1 %vm342_vm0, %v341_v1 }
   0x7   :  { %12 = vsyncpa [#allocation3], 0  ;;  %291 = vmatprep.subr.bf16.mxu1 %v341_v1  ;;  %v314_v5 = vld [vmem:[%s423_s3] sm:$0xff]   ;;  %v315_v6 = vld [vmem:[%s425_s5 + $0x18] sm:$0xff]   ;;  %vm114_vm2 = vcmask 261120   ;;  %vm199_vm3 = vcmask 523264  }
   0x8   :  { %298 = vmatpush3.bf16.msra.mxu0 %v315_v6  ;;  %v316_v7 = vld [vmem:[%s425_s5 + $0x10] sm:$0xff]   ;;  %v260_v8 = vld [vmem:[%s422_s2] ss:$0 sm:$0xff]  ;;  %v317_v16 = vld [vmem:[%s425_s5 + $0x8] sm:$0xff]   ;;  %vm244_vm4 = vcmask 64512  }
   0x9   :  { %299 = vmatprep.subr.bf16.mxu0 %v341_v1  ;;  %v318_v17 = vld [vmem:[%s425_s5] sm:$0xff]   ;;  %s343_s5 = smov [#allocation2]  }
   0xa   :  { %292 = vmatpush3.bf16.msra.mxu1 %v314_v5  ;;  %v263_v18 = vld [vmem:[%s424_s4] ss:$0 sm:$0xff]  ;;  %s252_s19 = sshll.u32 %s343_s5, 4  ;;  %s253_s19 = int_to_ptr.vmem [resolvable:$true] %s252_s19 }
   0xb   :  { %v267_v26 = vld [vmem:[%s426_s6] ss:$0 sm:$0xff]  ;;  %s319_s4 = scalar_lea.vmem %s253_s19, 128  ;;  %p324_p1 = scmp.lt.s32.totalorder %s253_s19, %s253_s19 }
   0xc   :  { %300 = vmatpush3.bf16.msra.mxu0 %v316_v7  ;;  %p320_p0 = scmp.ne.s32.totalorder %s253_s19, %s319_s4  ;;  %p325_p2 = scmp.lt.s32.totalorder %s319_s4, %s319_s4 }
   0xd   :  { %301 = vmatprep.subr.bf16.mxu0 %v341_v1 }
   0xe   :  { %p326_p3 = por %p325_p2, %p324_p1 }
  0x10   :  { %302 = vmatpush3.bf16.msra.mxu0 %v317_v16  ;;  %p327_p4 = pnand %p326_p3, %p320_p0 }
  0x11   :  { %303 = vmatprep.subr.bf16.mxu0 %v341_v1 }
  0x14   :  { %304 = vmatpush3.bf16.msra.mxu0 %v318_v17 }
  0xc5   :  { %v83_v9 = vpop.f32.mrf.mxu1 }
  0xc6   :  { %v84_v10 = vadd.f32 %v260_v8, %v83_v9 }
  0xc7   :  { %v287_v11 = vpop.f32.mrf.mxu1 }
  0xc8   :  { %v89_v12 = vmax.f32 %v84_v10, 0.0 }
  0xc9   :  { %v86_v13 = vpop.f32.mrf.mxu1 }
  0xca   :  { %v90_v14 = vpack.c.bf16 %v89_v12, %v89_v12 }
  0xcb   :  { %v288_v15 = vpop.f32.mrf.mxu1 }
  0xcc   :  { %294 = vmatmul.mubr.msk.bf16.vlgmr.msra.gmra.mxu1 %vm114_vm2, %v90_v14 }
 0x18c   :  { %v152_v19 = vpop.f32.mrf.mxu1 }
 0x18d   :  { %v153_v20 = vadd.f32 %v263_v18, %v152_v19 }
 0x18e   :  { %v295_v21 = vpop.f32.mrf.mxu1 }
 0x18f   :  { %v158_v22 = vmax.f32 %v153_v20, 0.0 }
 0x190   :  { %v155_v23 = vpop.f32.mrf.mxu1 }
 0x191   :  { %v159_v24 = vpack.c.bf16 %v158_v22, %v158_v22 }
 0x192   :  { %v296_v25 = vpop.f32.mrf.mxu1 }
 0x193   :  { %306 = vmatmul.mubr.msk.bf16.vlgmr.msra.gmra.mxu0 %vm199_vm3, %v159_v24 }
 0x253   :  { %v237_v27 = vpop.f32.mrf.mxu0 }
 0x254   :  { %v238_v28 = vadd.f32 %v267_v26, %v237_v27 }
 0x255   :  { %v307_v29 = vpop.f32.mrf.mxu0 }
 0x256   :  { %v243_v30 = vmax.f32 %v238_v28, 0.0 }
 0x257   :  { %v240_v31 = vpop.f32.mrf.mxu0 }
 0x258   :  { %245 = vst.msk [vmem:[#allocation2] sm:$0xff] %vm244_vm4, %v243_v30 }
 0x259   :  { %v308_v32 = vpop.f32.mrf.mxu0 }
 0x25a   :  { %330 = shalt.err (!%p327_p4)
}
 0x25b   :  { %255 = dma.vmem_to_hbm [thread:$0]  %s253_s19, 128, %s427_s7, [#allocation3]  }
 0x25c   :  { %339 = dma.done.wait [#allocation3], 128  }
 0x25d   :  { %340 = vsyncadd [#allocation3], 4294967168 }
 0x25e   :  { %259 = vsyncpa [#allocation3], 1 }

</bundles_post_ra>
